<compile_context>
chip_gen: v7x
topology: tpu7x:2x2x1
jax: 0.10.0
libtpu: 0.0.40
codegen_flags: <defaults>
</compile_context>

<pallas_src>
import functools

import jax
import jax.numpy as jnp
from jax import lax
from jax.experimental import pallas as pl
from jax.experimental.pallas import tpu as pltpu


# --------------------------------------------------------------------------
# shared per-tile compute: segment one-hot gather + add + LayerNorm
# --------------------------------------------------------------------------
def _embed_layernorm(tok, pos, seg_ids, segtab, gamma, beta, eps):
    rows = seg_ids.shape[0]
    ns = segtab.shape[0]
    seg_onehot = (seg_ids == lax.broadcasted_iota(jnp.int32, (rows, ns), 1)
                  ).astype(jnp.float32)
    t3 = jnp.dot(seg_onehot, segtab, preferred_element_type=jnp.float32)  # MXU
    e = tok + pos + t3
    mean = jnp.mean(e, axis=-1, keepdims=True)
    centered = e - mean
    var = jnp.mean(centered * centered, axis=-1, keepdims=True)
    inv = lax.rsqrt(var + eps)
    return centered * inv * gamma + beta


# --------------------------------------------------------------------------
# RESIDENT path: whole token table in VMEM, one-hot MXU gather, 2D grid
# --------------------------------------------------------------------------
def embeddings_resident_kernel(ids_ref,     # (CHUNK, 1) int32
                               seg_ref,     # (CHUNK, 1) int32
                               tok_ref,     # (Vp, D)    f32 (VMEM resident)
                               pos_ref,     # (CHUNK, D) f32
                               segtab_ref,  # (NSp, D)   f32
                               gamma_ref,   # (1, D)     f32
                               beta_ref,    # (1, D)     f32
                               out_ref,     # (CHUNK, D) f32
                               *, eps):
    ids = ids_ref[...]
    rows = ids.shape[0]
    vocab = tok_ref.shape[0]
    tok_onehot = (ids == lax.broadcasted_iota(jnp.int32, (rows, vocab), 1)
                  ).astype(jnp.float32)
    tok = jnp.dot(tok_onehot, tok_ref[...], preferred_element_type=jnp.float32)
    out_ref[...] = _embed_layernorm(
        tok, pos_ref[...], seg_ref[...], segtab_ref[...],
        gamma_ref[...], beta_ref[...], eps).astype(out_ref.dtype)


# --------------------------------------------------------------------------
# STREAMING path: token table in HBM, chunked double-buffered row gather
# --------------------------------------------------------------------------
def embeddings_stream_kernel(ids_ref,       # (B*S,)  int32, SMEM (scalar prefetch)
                             tok_hbm,       # (Vp, D) f32, HBM (pl.ANY)
                             seg_ref,       # (S, 1)  int32 VMEM tile (this batch)
                             pos_ref,       # (S, D)  f32 VMEM
                             segtab_ref,    # (NSp,D) f32 VMEM (tiny, resident)
                             gamma_ref,     # (1, D)  f32
                             beta_ref,      # (1, D)  f32
                             out_ref,       # (S, D)  f32 output tile
                             tok_buf,       # (2*CHUNK, D) f32 scratch (2 slots)
                             sem,           # (2,) DMA semaphores (one per slot)
                             *, seq_len, chunk, eps):
    b = pl.program_id(0)
    n_chunks = seq_len // chunk
    vocab = tok_hbm.shape[0]

    def issue(c, slot):
        """Start one row DMA per token id of chunk c into scratch slot `slot`.

        Returns the started copy descriptors so we later wait on the EXACT
        same descriptors (robust even if row sizes change, e.g. bf16/u32).
        """
        copies = []
        base = b * seq_len + c * chunk
        for j in range(chunk):                      # static, fully unrolled
            tok_id = jnp.clip(ids_ref[base + j], 0, vocab - 1)   # guard OOB DMA
            cp = pltpu.make_async_copy(
                tok_hbm.at[pl.ds(tok_id, 1), :],
                tok_buf.at[pl.ds(slot * chunk + j, 1), :],
                sem.at[slot],
            )
            cp.start()
            copies.append(cp)
        return copies

    inflight = issue(0, 0)                          # prime slot 0
    for c in range(n_chunks):                       # static chunk loop
        slot = c & 1
        # issue NEXT chunk before waiting -> gather overlaps this chunk's VPU work
        nxt = issue(c + 1, 1 - slot) if (c + 1) < n_chunks else []
        for cp in inflight:                         # wait on the real descriptors
            cp.wait()
        inflight = nxt

        r0 = c * chunk                              # static row offset
        tok = tok_buf[pl.ds(slot * chunk, chunk), :]          # (chunk, D)
        pos = pos_ref[pl.ds(r0, chunk), :]                    # (chunk, D)
        seg_ids = seg_ref[pl.ds(r0, chunk), :]                # (chunk, 1)
        out_ref[pl.ds(r0, chunk), :] = _embed_layernorm(
            tok, pos, seg_ids, segtab_ref[...],
            gamma_ref[...], beta_ref[...], eps).astype(out_ref.dtype)


# --------------------------------------------------------------------------
# wrapper
# --------------------------------------------------------------------------
def _round_up(x, m):
    return (x + m - 1) // m * m


def _pick_chunk(seq_len, max_chunk=256):
    c = min(seq_len, max_chunk)
    c -= c % 8
    c = max(c, 8)
    while c > 8 and seq_len % c:
        c -= 8
    return max(c, 8)


def _vmem_capacity_bytes():
    try:
        info = pltpu.get_tpu_info()
        return int(getattr(info, "vmem_capacity_bytes", 64 << 20))
    except Exception:
        return 64 << 20


def embeddings_forward(ids, seg, tok_table, pos_table, seg_table, gamma, beta,
                       eps=1e-12, *, force_streaming=False, chunk_rows=None):
    B, S = ids.shape
    V, D = tok_table.shape
    assert S % 8 == 0, "seq_len must be a multiple of 8 (sublane tiling)"

    if seg is None:                          # module's `seg=None` branch
        seg = jnp.zeros((B, S), jnp.int32)
        seg_table = jnp.zeros((1, D), jnp.float32)
    n_segments = seg_table.shape[0]

    # pad vocab / segment tables to sublane multiples with zero rows (never hit)
    Vp = _round_up(V, 8)
    NSp = _round_up(n_segments, 8)
    tok_p = jnp.zeros((Vp, D), jnp.float32).at[:V].set(tok_table.astype(jnp.float32))
    seg_p = jnp.zeros((NSp, D), jnp.float32).at[:n_segments].set(
        seg_table.astype(jnp.float32))
    pos_slab = pos_table[:S].astype(jnp.float32)            # positions 0..S-1
    gamma2 = gamma.reshape(1, D).astype(jnp.float32)
    beta2 = beta.reshape(1, D).astype(jnp.float32)

    # clamp like the JAX reference gather (PyTorch nn.Embedding would raise)
    ids_i = jnp.clip(ids.astype(jnp.int32), 0, V - 1)
    seg_i = jnp.clip(seg.astype(jnp.int32), 0, n_segments - 1)

    vmem_cap = _vmem_capacity_bytes()
    table_bytes = Vp * D * 4
    # Resident one-hot path only when the table (and the one-hot tiles) are
    # small; on v7x (64 MiB) this threshold is automatically tighter.
    resident_ok = (not force_streaming
                   and Vp <= 4096
                   and table_bytes <= min(vmem_cap // 4, 8 << 20))

    if chunk_rows is None:
        chunk_rows = _pick_chunk(S)
    assert chunk_rows % 8 == 0 and S % chunk_rows == 0
    n_chunks = S // chunk_rows

    if resident_ok:
        ids_col = ids_i.reshape(B * S, 1)
        seg_col = seg_i.reshape(B * S, 1)
        row_map = lambda b, c: (b * n_chunks + c, 0)
        grid_spec = pltpu.PrefetchScalarGridSpec(
            num_scalar_prefetch=0,
            grid=(B, n_chunks),
            in_specs=[
                pl.BlockSpec((chunk_rows, 1), row_map),          # token ids
                pl.BlockSpec((chunk_rows, 1), row_map),          # segment ids
                pl.BlockSpec((Vp, D), lambda b, c: (0, 0)),      # token table (resident)
                pl.BlockSpec((chunk_rows, D), lambda b, c: (c, 0)),  # positions
                pl.BlockSpec((NSp, D), lambda b, c: (0, 0)),     # segment table
                pl.BlockSpec((1, D), lambda b, c: (0, 0)),       # gamma
                pl.BlockSpec((1, D), lambda b, c: (0, 0)),       # beta
            ],
            out_specs=pl.BlockSpec((chunk_rows, D), row_map),
        )
        vmem_limit = min(int(vmem_cap * 0.9),
                         max(32 << 20, 4 * table_bytes + (8 << 20)))
        out = pl.pallas_call(
            functools.partial(embeddings_resident_kernel, eps=eps),
            out_shape=jax.ShapeDtypeStruct((B * S, D), jnp.float32),
            grid_spec=grid_spec,
            compiler_params=pltpu.CompilerParams(
                dimension_semantics=("parallel", "parallel"),
                vmem_limit_bytes=int(vmem_limit)),
        )(ids_col, seg_col, tok_p, pos_slab, seg_p, gamma2, beta2)
    else:
        ids_flat = ids_i.reshape(B * S)
        seg_col = seg_i.reshape(B * S, 1)
        grid_spec = pltpu.PrefetchScalarGridSpec(
            num_scalar_prefetch=1,
            grid=(B,),
            in_specs=[
                pl.BlockSpec(memory_space=pl.ANY),               # token table (HBM)
                pl.BlockSpec((S, 1), lambda b, ids: (b, 0)),     # segment ids tile
                pl.BlockSpec((S, D), lambda b, ids: (0, 0)),     # position slab
                pl.BlockSpec((NSp, D), lambda b, ids: (0, 0)),   # segment table
                pl.BlockSpec((1, D), lambda b, ids: (0, 0)),     # gamma
                pl.BlockSpec((1, D), lambda b, ids: (0, 0)),     # beta
            ],
            out_specs=pl.BlockSpec((S, D), lambda b, ids: (b, 0)),
            scratch_shapes=[
                pltpu.VMEM((2 * chunk_rows, D), jnp.float32),    # double buffer
                pltpu.SemaphoreType.DMA((2,)),                   # one sem per slot
            ],
        )
        vmem_limit = min(int(vmem_cap * 0.9), 32 << 20)
        out = pl.pallas_call(
            functools.partial(embeddings_stream_kernel,
                              seq_len=S, chunk=chunk_rows, eps=eps),
            out_shape=jax.ShapeDtypeStruct((B * S, D), jnp.float32),
            grid_spec=grid_spec,
            compiler_params=pltpu.CompilerParams(
                dimension_semantics=("parallel",),
                vmem_limit_bytes=int(vmem_limit)),
        )(ids_flat, tok_p, seg_col, pos_slab, seg_p, gamma2, beta2)

    return out.reshape(B, S, D)


# --------------------------------------------------------------------------
# pure-JAX reference (mirrors the PyTorch forward in eval mode)
# --------------------------------------------------------------------------
def embeddings_ref(ids, seg, tok_table, pos_table, seg_table, gamma, beta,
                   eps=1e-12):
    t1 = tok_table[ids]                                   # (B, S, D)
    pos = jnp.arange(ids.shape[1])
    t2 = pos_table[pos][None, :, :]                       # (1, S, D)
    e = t1 + t2
    if seg is not None:
        e = e + seg_table[seg]
    mean = e.mean(axis=-1, keepdims=True)
    var = ((e - mean) ** 2).mean(axis=-1, keepdims=True)
    return (e - mean) / jnp.sqrt(var + eps) * gamma.reshape(1, 1, -1) \
        + beta.reshape(1, 1, -1)


if __name__ == "__main__":
    key = jax.random.PRNGKey(0)

    # ---- test 1: module's toy cfg -> RESIDENT (one-hot MXU gather) path ----
    # cfg: vocab_size=50, dim=32, max_len=16, n_segments=2, p_drop_hidden=0.1
    vocab_size, dim, max_len, n_segments = 50, 32, 16, 2
    B, S = 2, 8
    k = jax.random.split(key, 10)
    tok_table = jax.random.normal(k[0], (vocab_size, dim), dtype=jnp.float32)
    pos_table = jax.random.normal(k[1], (max_len, dim), dtype=jnp.float32)
    seg_table = jax.random.normal(k[2], (n_segments, dim), dtype=jnp.float32)
    gamma = jnp.ones((dim,), dtype=jnp.float32)
    beta = jnp.zeros((dim,), dtype=jnp.float32)
    ids = jax.random.randint(k[3], (B, S), 0, vocab_size, dtype=jnp.int32)
    seg = jax.random.randint(k[4], (B, S), 0, n_segments, dtype=jnp.int32)

    out = embeddings_forward(ids, seg, tok_table, pos_table, seg_table,
                             gamma, beta)
    out = jax.block_until_ready(out)
    ref = embeddings_ref(ids, seg, tok_table, pos_table, seg_table, gamma, beta)
    assert out.shape == (B, S, dim)
    assert jnp.allclose(out, ref, atol=1e-4, rtol=1e-4), "resident path mismatch"

    # ---- test 2: forced STREAMING (HBM gather + chunked double buffering) ---
    vocab2, dim2, max_len2, nseg2 = 512, 256, 32, 2
    B2, S2 = 2, 16
    tok2 = jax.random.normal(k[5], (vocab2, dim2), dtype=jnp.float32)
    pos2 = jax.random.normal(k[6], (max_len2, dim2), dtype=jnp.float32)
    segt2 = jax.random.normal(k[7], (nseg2, dim2), dtype=jnp.float32)
    gamma2 = 1.0 + 0.1 * jax.random.normal(k[8], (dim2,), dtype=jnp.float32)
    beta2 = 0.1 * jax.random.normal(k[9], (dim2,), dtype=jnp.float32)
    ids2 = jax.random.randint(jax.random.PRNGKey(1), (B2, S2), 0, vocab2,
                              dtype=jnp.int32)
    seg2 = jax.random.randint(jax.random.PRNGKey(2), (B2, S2), 0, nseg2,
                              dtype=jnp.int32)

    out2 = embeddings_forward(ids2, seg2, tok2, pos2, segt2, gamma2, beta2,
                              force_streaming=True, chunk_rows=8)
    out2 = jax.block_until_ready(out2)
    ref2 = embeddings_ref(ids2, seg2, tok2, pos2, segt2, gamma2, beta2)
    assert out2.shape == (B2, S2, dim2)
    assert jnp.allclose(out2, ref2, atol=1e-4, rtol=1e-4), "streaming path mismatch"

    print("KERNEL_OK")
</pallas_src>

<mosaic_0001>
module attributes {stable_mosaic.version = 11 : i64} {
  func.func @embeddings_resident_kernel(%arg0: i32, %arg1: i32, %arg2: memref<8x1xi32, #tpu.memory_space<vmem>>, %arg3: memref<8x1xi32, #tpu.memory_space<vmem>>, %arg4: memref<56x32xf32, #tpu.memory_space<vmem>>, %arg5: memref<8x32xf32, #tpu.memory_space<vmem>>, %arg6: memref<8x32xf32, #tpu.memory_space<vmem>>, %arg7: memref<1x32xf32, #tpu.memory_space<vmem>>, %arg8: memref<1x32xf32, #tpu.memory_space<vmem>>, %arg9: memref<8x32xf32, #tpu.memory_space<vmem>>) attributes {dimension_semantics = [#tpu.dimension_semantics<parallel>, #tpu.dimension_semantics<parallel>], iteration_bounds = array<i64: 2, 1>, scalar_prefetch = 0 : i64, scratch_operands = 0 : i64, tpu.core_type = #tpu.core_type<tc>, window_params = [{transform_indices = @transform_0, window_bounds = array<i64: 8, 1>}, {transform_indices = @transform_1, window_bounds = array<i64: 8, 1>}, {pipeline_mode = #tpu.pipeline_mode<synchronous>, transform_indices = @transform_2, window_bounds = array<i64: 56, 32>}, {transform_indices = @transform_3, window_bounds = array<i64: 8, 32>}, {pipeline_mode = #tpu.pipeline_mode<synchronous>, transform_indices = @transform_4, window_bounds = array<i64: 8, 32>}, {pipeline_mode = #tpu.pipeline_mode<synchronous>, transform_indices = @transform_5, window_bounds = array<i64: 1, 32>}, {pipeline_mode = #tpu.pipeline_mode<synchronous>, transform_indices = @transform_6, window_bounds = array<i64: 1, 32>}, {transform_indices = @transform_7, window_bounds = array<i64: 8, 32>}]} {
    %c0 = arith.constant 0 : index
    %c0_0 = arith.constant 0 : index
    %0 = vector.load %arg2[%c0, %c0_0] : memref<8x1xi32, #tpu.memory_space<vmem>>, vector<8x1xi32>
    %1 = tpu.iota {dimensions = array<i32: 1>} : vector<8x56xi32>
    %2 = vector.broadcast %0 : vector<8x1xi32> to vector<8x56xi32>
    %3 = arith.cmpi eq, %2, %1 : vector<8x56xi32>
    %4 = arith.extui %3 : vector<8x56xi1> to vector<8x56xi32>
    %5 = arith.sitofp %4 : vector<8x56xi32> to vector<8x56xf32>
    %c0_1 = arith.constant 0 : index
    %c0_2 = arith.constant 0 : index
    %6 = vector.load %arg4[%c0_1, %c0_2] : memref<56x32xf32, #tpu.memory_space<vmem>>, vector<56x32xf32>
    %cst = arith.constant dense<0.000000e+00> : vector<8x32xf32>
    %7 = tpu.matmul %5, %6, %cst {dimension_numbers = #tpu.dot_dimension_numbers<[1], [0], [0], [1], [0, 0, 1, 1], [], []>} : vector<8x56xf32>, vector<56x32xf32>, vector<8x32xf32> -> vector<8x32xf32>
    %c0_3 = arith.constant 0 : index
    %c0_4 = arith.constant 0 : index
    %8 = vector.load %arg5[%c0_3, %c0_4] : memref<8x32xf32, #tpu.memory_space<vmem>>, vector<8x32xf32>
    %c0_5 = arith.constant 0 : index
    %c0_6 = arith.constant 0 : index
    %9 = vector.load %arg3[%c0_5, %c0_6] : memref<8x1xi32, #tpu.memory_space<vmem>>, vector<8x1xi32>
    %c0_7 = arith.constant 0 : index
    %c0_8 = arith.constant 0 : index
    %10 = vector.load %arg6[%c0_7, %c0_8] : memref<8x32xf32, #tpu.memory_space<vmem>>, vector<8x32xf32>
    %c0_9 = arith.constant 0 : index
    %c0_10 = arith.constant 0 : index
    %11 = vector.load %arg7[%c0_9, %c0_10] : memref<1x32xf32, #tpu.memory_space<vmem>>, vector<1x32xf32>
    %c0_11 = arith.constant 0 : index
    %c0_12 = arith.constant 0 : index
    %12 = vector.load %arg8[%c0_11, %c0_12] : memref<1x32xf32, #tpu.memory_space<vmem>>, vector<1x32xf32>
    %13 = tpu.iota {dimensions = array<i32: 1>} : vector<8x8xi32>
    %14 = vector.broadcast %9 : vector<8x1xi32> to vector<8x8xi32>
    %15 = arith.cmpi eq, %14, %13 : vector<8x8xi32>
    %16 = arith.extui %15 : vector<8x8xi1> to vector<8x8xi32>
    %17 = arith.sitofp %16 : vector<8x8xi32> to vector<8x8xf32>
    %cst_13 = arith.constant dense<0.000000e+00> : vector<8x32xf32>
    %18 = tpu.matmul %17, %10, %cst_13 {dimension_numbers = #tpu.dot_dimension_numbers<[1], [0], [0], [1], [0, 0, 1, 1], [], []>} : vector<8x8xf32>, vector<8x32xf32>, vector<8x32xf32> -> vector<8x32xf32>
    %19 = arith.addf %7, %8 : vector<8x32xf32>
    %20 = arith.addf %19, %18 : vector<8x32xf32>
    %cst_14 = arith.constant dense<0.000000e+00> : vector<8xf32>
    %21 = vector.multi_reduction <add>, %20, %cst_14 [1] : vector<8x32xf32> to vector<8xf32>
    %22 = vector.shape_cast %21 : vector<8xf32> to vector<8x1xf32>
    %cst_15 = arith.constant 3.200000e+01 : f32
    %23 = vector.broadcast %cst_15 : f32 to vector<8x1xf32>
    %24 = arith.divf %22, %23 : vector<8x1xf32>
    %25 = vector.broadcast %24 : vector<8x1xf32> to vector<8x32xf32>
    %26 = arith.subf %20, %25 : vector<8x32xf32>
    %27 = arith.mulf %26, %26 : vector<8x32xf32>
    %cst_16 = arith.constant dense<0.000000e+00> : vector<8xf32>
    %28 = vector.multi_reduction <add>, %27, %cst_16 [1] : vector<8x32xf32> to vector<8xf32>
    %29 = vector.shape_cast %28 : vector<8xf32> to vector<8x1xf32>
    %cst_17 = arith.constant 3.200000e+01 : f32
    %30 = vector.broadcast %cst_17 : f32 to vector<8x1xf32>
    %31 = arith.divf %29, %30 : vector<8x1xf32>
    %cst_18 = arith.constant 9.99999996E-13 : f32
    %32 = vector.broadcast %cst_18 : f32 to vector<8x1xf32>
    %33 = arith.addf %31, %32 : vector<8x1xf32>
    %34 = math.rsqrt %33 : vector<8x1xf32>
    %35 = vector.broadcast %34 : vector<8x1xf32> to vector<8x32xf32>
    %36 = arith.mulf %26, %35 : vector<8x32xf32>
    %37 = vector.broadcast %11 : vector<1x32xf32> to vector<8x32xf32>
    %38 = arith.mulf %36, %37 : vector<8x32xf32>
    %39 = vector.broadcast %12 : vector<1x32xf32> to vector<8x32xf32>
    %40 = arith.addf %38, %39 : vector<8x32xf32>
    %c0_19 = arith.constant 0 : index
    %c0_20 = arith.constant 0 : index
    %41 = vector.load %arg9[%c0_19, %c0_20] : memref<8x32xf32, #tpu.memory_space<vmem>>, vector<8x32xf32>
    tpu.vector_store %arg9[%c0_19, %c0_20], %40 {strides = array<i32>} : memref<8x32xf32, #tpu.memory_space<vmem>>, vector<8x32xf32>,
    return
  }
  func.func @transform_0(%arg0: i32, %arg1: i32) -> (i32, i32) {
    %c1_i32 = arith.constant 1 : i32
    %0 = arith.muli %arg0, %c1_i32 : i32
    %1 = arith.addi %0, %arg1 : i32
    %c0_i32 = arith.constant 0 : i32
    %c0_i32_0 = arith.constant 0 : i32
    return %1, %c0_i32 : i32, i32
  }
  func.func @transform_1(%arg0: i32, %arg1: i32) -> (i32, i32) {
    %c1_i32 = arith.constant 1 : i32
    %0 = arith.muli %arg0, %c1_i32 : i32
    %1 = arith.addi %0, %arg1 : i32
    %c0_i32 = arith.constant 0 : i32
    %c0_i32_0 = arith.constant 0 : i32
    return %1, %c0_i32 : i32, i32
  }
  func.func @transform_2(%arg0: i32, %arg1: i32) -> (i32, i32) {
    %c0_i32 = arith.constant 0 : i32
    %c0_i32_0 = arith.constant 0 : i32
    %c0_i32_1 = arith.constant 0 : i32
    return %c0_i32, %c0_i32_0 : i32, i32
  }
  func.func @transform_3(%arg0: i32, %arg1: i32) -> (i32, i32) {
    %c0_i32 = arith.constant 0 : i32
    %c0_i32_0 = arith.constant 0 : i32
    return %arg1, %c0_i32 : i32, i32
  }
  func.func @transform_4(%arg0: i32, %arg1: i32) -> (i32, i32) {
    %c0_i32 = arith.constant 0 : i32
    %c0_i32_0 = arith.constant 0 : i32
    %c0_i32_1 = arith.constant 0 : i32
    return %c0_i32, %c0_i32_0 : i32, i32
  }
  func.func @transform_5(%arg0: i32, %arg1: i32) -> (i32, i32) {
    %c0_i32 = arith.constant 0 : i32
    %c0_i32_0 = arith.constant 0 : i32
    %c0_i32_1 = arith.constant 0 : i32
    return %c0_i32, %c0_i32_0 : i32, i32
  }
  func.func @transform_6(%arg0: i32, %arg1: i32) -> (i32, i32) {
    %c0_i32 = arith.constant 0 : i32
    %c0_i32_0 = arith.constant 0 : i32
    %c0_i32_1 = arith.constant 0 : i32
    return %c0_i32, %c0_i32_0 : i32, i32
  }
  func.func @transform_7(%arg0: i32, %arg1: i32) -> (i32, i32) {
    %c1_i32 = arith.constant 1 : i32
    %0 = arith.muli %arg0, %c1_i32 : i32
    %1 = arith.addi %0, %arg1 : i32
    %c0_i32 = arith.constant 0 : i32
    %c0_i32_0 = arith.constant 0 : i32
    return %1, %c0_i32 : i32, i32
  }
}

</mosaic_0001>

<bundles_post_ra>
// kernel: tpu_custom_call.1
= control target key start
LH: loop header
LB: loop body
LE: loop exit
PB: predicated region body
PF: predicated region fallthrough
CT: control target
= control target key end

     0   :  { %12 = vsyncpa [#allocation3], 0  ;;  %s1053_s0 = inlined_call_operand.vmem [shape: s32[16,1], index: 0, kind: input, shape index: {}]   ;;  %s1054_s1 = inlined_call_operand.vmem [shape: s32[16,1], index: 1, kind: input, shape index: {}]   ;;  %s1055_s2 = inlined_call_operand.vmem [shape: f32[56,32], index: 2, kind: input, shape index: {}]   ;;  %s1056_s3 = inlined_call_operand.vmem [shape: f32[8,32], index: 3, kind: input, shape index: {}]   ;;  %s1057_s4 = inlined_call_operand.vmem [shape: f32[8,32], index: 4, kind: input, shape index: {}]   ;;  %s1058_s5 = inlined_call_operand.vmem [shape: f32[1,32], index: 5, kind: input, shape index: {}]   ;;  %s1059_s6 = inlined_call_operand.vmem [shape: f32[1,32], index: 6, kind: input, shape index: {}]   ;;  %s1060_s7 = inlined_call_operand.hbm [shape: f32[16,32], index: 7, kind: output, shape index: {}]  }
   0x1   :  { %14 = vsyncpa [#allocation3 + $0x1], 0  ;;  %s902_s24 = smov 0   ;;  %s904_s25 = smov 0  }
   0x2   :  { %s906_s26 = smov 0   ;;  %s908_s27 = smov 0  }
   0x3   :  { %s910_s28 = smov 0   ;;  %s912_s29 = smov 0  }
   0x4 LB: > { %s653_s30 = sadd.s32 4294967295, %s855_s29   ;;  %s654_s8 = sadd.s32 4294967294, %s855_s29   ;;  %s855_s29 = sphi %s912_s29, %s20_s29   ;;  %s851_s28 = sphi %s910_s28, %s1067_s28   ;;  %s847_s27 = sphi %s908_s27, %s1066_s27   ;;  %s843_s26 = sphi %s906_s26, %s1065_s26   ;;  %s839_s25 = sphi %s904_s25, %s1064_s25   ;;  %s835_s24 = sphi %s902_s24, %s1063_s24  }
   0x5   : > { %s32_s9 = sadd.s32 1, %s851_s28  ;;  %s207_s10 = sadd.s32 1, %s843_s26 }
   0x6   : > { %p34_p0 = scmp.ge.s32.totalorder %s32_s9, 2  ;;  %p217_p1 = scmp.ne.s32.totalorder %s843_s26, %s839_s25 }
   0x7   : > { %p218_p2 = scmp.eq.s32.totalorder %s653_s30, 1  ;;  %p223_p3 = scmp.ne.s32.totalorder %s839_s25, %s835_s24 }
   0x8   : > { %s1069_s9 = smov (%p34_p0, %s32_s9), 0  ;;  %p224_p5 = scmp.eq.s32.totalorder %s654_s8, 1 }
   0x9   : > { %p942_p4 = por %p218_p2, %p217_p1  ;;  %s204_s12 = ssub.s32 %s851_s28, %s1069_s9 }
   0xa   : > { %p658_p6 = scmp.ge.s32.totalorder %s855_s29, 1  ;;  %p205_p7 = scmp.eq.s32.totalorder %s204_s12, 0 }
   0xb   : > { %p949_p8 = por %p224_p5, %p223_p3  ;;  %p279_p9 = scmp.lt.s32.totalorder %s855_s29, 3 }
   0xc   : > { %s955_s14 = scalar_select %p205_p7, %s843_s26, %s207_s10  }
   0xd   : > { %p280_p10 = pnand %p658_p6, %p279_p9 }
   0xe   : > { %p321_p11 = scmp.lt.s32.totalorder (!%p280_p10), %s847_s27, 1  ;;  %v346_v0 = vld [vmem:[%s1055_s2] sm:$0xff] (!%p280_p10)  ;;  %v347_v1 = vld [vmem:[%s1055_s2 + $0x8] sm:$0xff] (!%p280_p10)  ;;  %v348_v2 = vld [vmem:[%s1055_s2 + $0x10] sm:$0xff] (!%p280_p10)  ;;  %v857_v3 = vmov (!%p280_p10), 0   ;;  %v858_v4 = vmov (!%p280_p10), 0.0|0.0   ;;  %v338_v16 = vlaneseq (!%p280_p10) }
   0xf   : > { %283 = sbr.rel (%p280_p10) target bundleno = 702 (0x2be), region = 48  ;;  %774 = vset.pattern.permute.xlu0 (!%p280_p10), %v857_v3  ;;  %704 = vmatprep.subr.bf16.mxu0 (!%p280_p10), %v858_v4  ;;  %v705_v5 = vpack.c.bf16 (!%p280_p10), %v347_v1, %v346_v0  ;;  %v349_v6 = vld [vmem:[%s1055_s2 + $0x18] sm:$0xff] (!%p280_p10)  ;;  %v859_v7 = vmov (!%p280_p10), 0.0   ;;  %v350_v9 = vld [vmem:[%s1055_s2 + $0x20] sm:$0xff] (!%p280_p10)  ;;  %v351_v10 = vld [vmem:[%s1055_s2 + $0x28] sm:$0xff] (!%p280_p10)  ;;  %vm860_vm0 = vmmov (!%p280_p10), 0  }
  0x10   : > { %682 = vmatprep.subr.mxu1 (!%p280_p10), %v859_v7  ;;  %v708_v8 = vpack.c.bf16 (!%p280_p10), %v349_v6, %v348_v2  ;;  %v355_v12 = vld [vmem:[%s1057_s4] sm:$0xff] (!%p280_p10)  ;;  %v711_v13 = vpack.c.bf16 (!%p280_p10), %v351_v10, %v350_v9  ;;  %684 = vmatprep.mubr.msk.f32.mxu1 (!%p280_p10), %vm860_vm0, %v859_v7  ;;  %v352_v15 = vld [vmem:[%s1055_s2 + $0x30] sm:$0xff] (!%p280_p10)  ;;  %v339_v17 = vand.u32 (!%p280_p10), 127, %v338_v16  ;;  %vm364_vm1 = vcmask (!%p280_p10), 64512   ;;  %s317_s15 = sand.u32 (!%p280_p10), 1, %s839_s25   ;;  %s669_s21 = sshll.u32 (!%p280_p10), %s847_s27, 7 }
  0x11   : > { %706 = vmatpush3.bf16.msra.mxu0 (!%p280_p10), %v705_v5  ;;  %683 = vmatpush3.msra.mxu1 (!%p280_p10), %v355_v12  ;;  %vm438_vm3 = vcmask (!%p280_p10), 457728   ;;  %v353_v22 = vld [vmem:[%s1056_s3] sm:$0xff] (!%p280_p10)  ;;  %vm513_vm5 = vcmask (!%p280_p10), 261120   ;;  %s659_s16 = sshll.u32 (!%p280_p10), %s317_s15, 3  ;;  %s1005_s10 = scalar_lea.hbm (!%p280_p10), %s1060_s7, %s669_s21 }
  0x12   : > { %707 = vmatprep.subr.bf16.mxu0 (!%p280_p10), %v858_v4  ;;  %701 = vmatprep.mubr.msk.f32.mxu0 (!%p280_p10), %vm860_vm0, %v859_v7  ;;  %v666_v39 = vld [vmem:[%s1058_s5] ss:$0 sm:$0xff] (!%p280_p10)  ;;  %s319_s22 = scalar_lea.vmem (!%p280_p10), [#allocation2], %s659_s16 }
  0x13   : > { %v667_v41 = vld [vmem:[%s1059_s6] ss:$0 sm:$0xff] (!%p280_p10) }
  0x15   : > { %709 = vmatpush3.bf16.msra.mxu0 (!%p280_p10), %v708_v8 }
  0x16   : > { %s322_s23 = scalar_select %p321_p11, %s847_s27, 1  ;;  %710 = vmatprep.subr.bf16.mxu0 %v858_v4 }
  0x17   : > { %s861_s27 = smov [#allocation2]  }
  0x18   : > { %s660_s30 = sshll.u32 %s322_s23, 3  ;;  %s558_s23 = sshll.u32 %s319_s22, 4  ;;  %s1007_s23 = int_to_ptr.vmem [resolvable:$true] %s558_s23 }
  0x19   : > { %s330_s12 = scalar_lea.vmem %s1054_s1, %s660_s30  ;;  %s324_s17 = scalar_lea.vmem %s1053_s0, %s660_s30  ;;  %712 = vmatpush3.bf16.msra.mxu0 %v711_v13 }
  0x1a   : > { %v354_v11 = vld [vmem:[%s330_s12] sm:$0xff]  ;;  %699 = vmatprep.subr.mxu0 %v859_v7  ;;  %s544_s12 = scalar_lea.sflag [#allocation3], %s317_s15  ;;  %s781_s16 = sshll.u32 %s861_s27, 4  ;;  %s782_s16 = int_to_ptr.vmem [resolvable:$false] %s781_s16 }
  0x1b   : > { %359 = vperm.xlu0 %774, %v354_v11   ;;  %v337_v14 = vld [vmem:[%s324_s17] sm:$0xff]  ;;  %s777_s17 = scalar_lea.vmem %s1007_s23, 128  ;;  %s783_s18 = scalar_lea.vmem %s782_s16, 256 }
  0x1c   : > { %p778_p12 = scmp.ne.s32.totalorder %s1007_s23, %s777_s17  ;;  %p784_p1 = scmp.lt.s32.totalorder %s1007_s23, %s782_s16 }
  0x1d   : > { %700 = vmatpush3.msra.mxu0 %v352_v15  ;;  %p785_p2 = scmp.lt.s32.totalorder %s783_s18, %s777_s17 }
  0x1e   : > { %p779_p13 = pnand %p778_p12, %p942_p4 }
  0x1f   : > { %341 = vperm.xlu0 %774, %v337_v14   ;;  %p786_p3 = por %p785_p2, %p784_p1 }
  0x20   : > { %p780_p0 = pneg %p779_p13 }
  0x22   : > { %p787_p5 = pnand %p786_p3, %p780_p0 }
  0x9a   : > { %v360_v18 = vpop.permute.xlu0 %359 }
  0x9b   : > { %vm361_vm2 = vcmp.eq.s32.totalorder %v360_v18, %v339_v17 }
  0x9c   : > { %v663_v19 = vsel %vm361_vm2, 1.0, %v859_v7 }
  0x9d   : > { %685 = vmatmul.mubr.msk.f32.vlgmr.msra.gmra.mrb[0].mxu1 %vm364_vm1, %v663_v19 }
  0x9e   : > { %v342_v20 = vpop.permute.xlu0 %341 }
  0x9f   : > { %vm343_vm4 = vcmp.eq.s32.totalorder %v342_v20, %v339_v17 }
  0xa0   : > { %v662_v21 = vsel %vm343_vm4, 1.0, %v859_v7 }
  0xa1   : > { %702 = vmatmul.mubr.msk.f32.vlgmr.msra.gmra.mrb[0].mxu0 %vm438_vm3, %v662_v21 }
 0x170   : > { %v434_v23 = vpop.f32.mrb[0].mxu1 }
 0x171   : > { %v686_v24 = vpop.f32.mrb[1].mxu1  ;;  %v713_v25 = vadd.f32 %v434_v23, %v353_v22 }
 0x174   : > { %v508_v26 = vpop.f32.mrb[0].mxu0 }
 0x175   : > { %v714_v27 = vadd.f32 %v713_v25, %v508_v26  ;;  %v703_v28 = vpop.f32.mrb[1].mxu0 }
 0x177   : > { %v514_v29 = vsel %vm513_vm5, %v714_v27, 0.0 }
 0x178   : > { %515 = vadd.xlane.f32.xlu1 %v514_v29 }
 0x205   : > { %v516_v30 = vpop.xlane.xlu1 %515 }
 0x206   : > { %v518_v31 = vmul.f32 0.03125, %v516_v30 }
 0x208   : > { %v519_v32 = vsub.f32 %v714_v27, %v518_v31 }
 0x20a   : > { %v520_v33 = vmul.f32 %v519_v32, %v519_v32 }
 0x20c   : > { %v521_v34 = vsel %vm513_vm5, %v520_v33, 0.0 }
 0x20d   : > { %522 = vadd.xlane.f32.xlu1 %v521_v34 }
 0x29a   : > { %v523_v35 = vpop.xlane.xlu1 %522 }
 0x29b   : > { %v524_v36 = vmul.f32 0.03125, %v523_v35 }
 0x29d   : > { %v525_v37 = vadd.f32 1e-12, %v524_v36 }
 0x29f   : > { %775 = vrsqrt.f32 %v525_v37 }
 0x2a9   : > { %v776_v38 = vpop.eup %775 }
 0x2aa   : > { %v527_v40 = vmul.f32 %v776_v38, %v519_v32 }
 0x2ac   : > { %v534_v42 = vmul.f32 %v666_v39, %v527_v40 }
 0x2ae   : > { %v541_v43 = vadd.f32 %v667_v41, %v534_v42 }
 0x2b0   : > { %542 = vst.msk [vmem:[%s319_s22] sm:$0xff] %vm513_vm5, %v541_v43 }
 0x2b1   : > { %790 = shalt.err (!%p787_p5)
}
 0x2b2   : > { %s791_s15 = scalar_lea.hbm %s1005_s10, 128  ;;  %s795_s21 = scalar_lea.hbm %s1060_s7, 256 }
 0x2b3   : > { %p792_p6 = scmp.ne.s32.totalorder %s1005_s10, %s791_s15  ;;  %p796_p10 = scmp.lt.u32.totalorder %s1005_s10, %s1060_s7 }
 0x2b4   : > { %p797_p11 = scmp.lt.u32.totalorder %s795_s21, %s791_s15  ;;  %p799_p13 = scmp.lt.u32.totalorder %s791_s15, %s1005_s10 }
 0x2b5   : > { %p793_p7 = pnand %p792_p6, %p942_p4 }
 0x2b6   : > { %p798_p12 = por %p797_p11, %p796_p10 }
 0x2b7   : > { %p794_p9 = pneg %p793_p7 }
 0x2b8   : > { %p800_p0 = por %p799_p13, %p798_p12 }
 0x2ba   : > { %p801_p1 = pnand %p800_p0, %p794_p9 }
 0x2bc   : > { %804 = shalt.err (!%p801_p1)
}
 0x2bd   : > { %715 = dma.vmem_to_hbm [thread:$0]  (%p942_p4), %s1007_s23, 128, %s1005_s10, %s544_s12  }
 0x2be PF: > { %p721_p2 = scmp.ge.s32.totalorder %s855_s29, 2  ;;  %s570_s8 = sand.u32 1, %s835_s24  }
 0x2bf   : > { %s571_s17 = scalar_lea.sflag [#allocation3], %s570_s8 }
 0x2c0   : > { %p718_p3 = pnand %p721_p2, %p949_p8 }
 0x2c2   : > { %830 = dma.done.wait (!%p718_p3), %s571_s17, 128  }
 0x2c3   : > { %832 = vsyncadd (!%p718_p3), %s571_s17, 4294967168  ;;  %s20_s29 = sadd.s32 1, %s855_s29   ;;  %s1063_s24 = smov %s839_s25 }
 0x2c4   : > { %p17_p5 = scmp.ge.s32.totalorder %s20_s29, 4   ;;  %s1064_s25 = smov %s843_s26 }
 0x2c5   : > { %s1065_s26 = smov %s955_s14  ;;  %s1066_s27 = smov %s851_s28 }
 0x2c6   : > { %s1067_s28 = smov %s1069_s9  ;;  %19 = sbr.rel (!%p17_p5) target bundleno = 4 (0x4), region = 89 }
 0x2cd   :  { %576 = vsyncpa [#allocation3], 1 }
 0x2ce   :  { %578 = vsyncpa [#allocation3 + $0x1], 1 }

</bundles_post_ra>
